<compile_context>
chip_gen: v7x
topology: tpu7x:2x2x1
jax: 0.10.0
libtpu: 0.0.40
codegen_flags: <defaults>
</compile_context>

<pallas_src>
import functools

import jax
import jax.numpy as jnp
from jax import lax
from jax.experimental import pallas as pl
from jax.experimental.pallas import tpu as pltpu

LANE = 128


def _ceil_to(x, m):
    return (x + m - 1) // m * m


# ----------------------------- Pallas kernels ------------------------------ #

def _conv1_bn_relu_kernel(x_ref, w_ref, s1_ref, b1_ref, s2_ref, b2_ref,
                          o_ref, acc_ref, *, stride, H, W, Wo):
    """One output row of relu(bn2(conv1_3x3_stride(relu(bn1(x)))))."""
    oy = pl.program_id(2)          # output row
    ky = pl.program_id(3)          # 3x3 row tap (reduction axis, "arbitrary")

    @pl.when(ky == 0)
    def _init():
        acc_ref[...] = jnp.zeros_like(acc_ref)

    row = stride * oy + ky                      # row index into the spatially padded x
    row_ok = (row >= 1) & (row <= H)            # conv zero-padding rows contribute 0

    # bn1 + relu fused on the raw input row (never round-trips HBM).  Phase p of a
    # row holds padded columns p, p+stride, ... so stride-s taps are contiguous slices.
    a_phases = []
    for p in range(stride):
        xv = x_ref[0, p].astype(jnp.float32)                        # (Wp_s, Cp_in)
        av = jnp.maximum(xv * s1_ref[...] + b1_ref[...], 0.0)
        col = p + stride * lax.broadcasted_iota(jnp.int32, av.shape, 0)
        valid = row_ok & (col >= 1) & (col <= W)
        a_phases.append(jnp.where(valid, av, 0.0))

    acc = acc_ref[...]
    for kx in range(3):                                             # unrolled width taps
        dx = kx // stride
        a_tap = a_phases[kx % stride][dx:dx + Wo, :]
        acc += jnp.dot(a_tap.astype(jnp.bfloat16), w_ref[3 * ky + kx],
                       preferred_element_type=jnp.float32)
    acc_ref[...] = acc

    @pl.when(ky == 2)
    def _finalize():                                                # bn2 + relu epilogue
        y = jnp.maximum(acc_ref[...] * s2_ref[...] + b2_ref[...], 0.0)
        o_ref[0, 0] = y.astype(o_ref.dtype)


def _conv2_add_identity_kernel(o1p_ref, w2_ref, xres_ref, o_ref, acc_ref, *, Wo):
    """One output row of conv2_3x3(out1) + x (identity shortcut fused)."""
    ky = pl.program_id(3)

    @pl.when(ky == 0)
    def _init():
        acc_ref[...] = xres_ref[0, 0].astype(jnp.float32)

    row = o1p_ref[0, 0].astype(jnp.float32)                         # (Wo+2, Cp_out)
    acc = acc_ref[...]
    for kx in range(3):
        acc += jnp.dot(row[kx:kx + Wo, :].astype(jnp.bfloat16), w2_ref[3 * ky + kx],
                       preferred_element_type=jnp.float32)
    acc_ref[...] = acc

    @pl.when(ky == 2)
    def _finalize():
        o_ref[0, 0] = acc_ref[...].astype(o_ref.dtype)


def _conv2_add_shortcut_kernel(o1p_ref, w2_ref, xs_ref, ws_ref, s1_ref, b1_ref,
                               o_ref, acc_ref, *, Wo):
    """One output row of conv2_3x3(out1) + convShortcut(relu(bn1(x))) (fused)."""
    ky = pl.program_id(3)

    @pl.when(ky == 0)
    def _init():
        xv = xs_ref[0, 0].astype(jnp.float32)                       # strided raw-x row
        sc = jnp.maximum(xv * s1_ref[...] + b1_ref[...], 0.0)       # recompute relu(bn1)
        acc_ref[...] = jnp.dot(sc.astype(jnp.bfloat16), ws_ref[...],
                               preferred_element_type=jnp.float32)

    row = o1p_ref[0, 0].astype(jnp.float32)
    acc = acc_ref[...]
    for kx in range(3):
        acc += jnp.dot(row[kx:kx + Wo, :].astype(jnp.bfloat16), w2_ref[3 * ky + kx],
                       preferred_element_type=jnp.float32)
    acc_ref[...] = acc

    @pl.when(ky == 2)
    def _finalize():
        o_ref[0, 0] = acc_ref[...].astype(o_ref.dtype)


# ------------------------------- wrappers ----------------------------------- #

def wrn_basic_block_nhwc(x, params, *, stride, equal_in_out, cout):
    """Eval-mode WRNBasicBlock forward on an NHWC activation.  Returns NHWC."""
    N, H, W, Cin = x.shape
    Cp_in = params["bn1_scale"].shape[1]
    Cp_out = params["bn2_scale"].shape[1]
    Ho = (H - 1) // stride + 1
    Wo = (W - 1) // stride + 1
    TN = 256 if Cp_out % 256 == 0 else 128      # lane-dense output-channel tile
    NJ = Cp_out // TN

    sem = pltpu.CompilerParams(
        dimension_semantics=("parallel", "parallel", "parallel", "arbitrary"))

    # ---- glue: channel pad (lane-dense), spatial zero pad, W phase split ----
    xc = jnp.pad(x.astype(jnp.float32), ((0, 0), (0, 0), (0, 0), (0, Cp_in - Cin)))
    xpad = jnp.pad(xc, ((0, 0), (1, 1), (1, 1), (0, 0)))
    Hp, Wp = H + 2, W + 2
    assert Wp % stride == 0
    Wps = Wp // stride
    xph = (xpad.reshape(N, Hp, Wps, stride, Cp_in)
               .transpose(0, 1, 3, 2, 4)
               .reshape(N, Hp * stride, Wps, Cp_in)
               .astype(jnp.bfloat16))

    # ---- kernel 1: conv1 (3x3, stride) with bn1+relu (input) and bn2+relu fused ----
    flops1 = 2 * N * Ho * Wo * 9 * Cp_in * Cp_out
    out1 = pl.pallas_call(
        functools.partial(_conv1_bn_relu_kernel, stride=stride, H=H, W=W, Wo=Wo),
        grid=(N, NJ, Ho, 3),
        in_specs=[
            # streamed padded-input row (block index along H is an element offset
            # because the block is 1 padded row wide)
            pl.BlockSpec((1, stride, Wps, Cp_in),
                         lambda n, j, oy, ky: (n, stride * oy + ky, 0, 0)),
            # weights: constant over the row axis -> VMEM resident
            pl.BlockSpec((9, Cp_in, TN), lambda n, j, oy, ky: (0, 0, j)),
            pl.BlockSpec((1, Cp_in), lambda n, j, oy, ky: (0, 0)),
            pl.BlockSpec((1, Cp_in), lambda n, j, oy, ky: (0, 0)),
            pl.BlockSpec((1, TN), lambda n, j, oy, ky: (0, j)),
            pl.BlockSpec((1, TN), lambda n, j, oy, ky: (0, j)),
        ],
        out_specs=pl.BlockSpec((1, 1, Wo, TN), lambda n, j, oy, ky: (n, oy, 0, j)),
        out_shape=jax.ShapeDtypeStruct((N, Ho, Wo, Cp_out), jnp.bfloat16),
        scratch_shapes=[pltpu.VMEM((Wo, TN), jnp.float32)],
        compiler_params=sem,
        cost_estimate=pl.CostEstimate(
            flops=flops1, transcendentals=0,
            bytes_accessed=3 * xph.size * 2 + 9 * Cp_in * Cp_out * 2
            + N * Ho * Wo * Cp_out * 2),
    )(xph, params["w1"], params["bn1_scale"], params["bn1_bias"],
      params["bn2_scale"], params["bn2_bias"])

    # ---- glue: zero pad out1 spatially (post-relu zeros == conv2 zero padding) ----
    o1p = jnp.pad(out1, ((0, 0), (1, 1), (1, 1), (0, 0)))

    flops2 = 2 * N * Ho * Wo * 9 * Cp_out * Cp_out
    common_in_specs = [
        pl.BlockSpec((1, 1, Wo + 2, Cp_out), lambda n, j, oy, ky: (n, oy + ky, 0, 0)),
        pl.BlockSpec((9, Cp_out, TN), lambda n, j, oy, ky: (0, 0, j)),
    ]
    out_spec = pl.BlockSpec((1, 1, Wo, TN), lambda n, j, oy, ky: (n, oy, 0, j))
    out_shape = jax.ShapeDtypeStruct((N, Ho, Wo, Cp_out), jnp.float32)

    # ---- kernel 2: conv2 (3x3, s=1) with the residual add fused ----
    if equal_in_out:
        assert stride == 1 and Cp_in == Cp_out
        y = pl.pallas_call(
            functools.partial(_conv2_add_identity_kernel, Wo=Wo),
            grid=(N, NJ, Ho, 3),
            in_specs=common_in_specs + [
                pl.BlockSpec((1, 1, Wo, TN), lambda n, j, oy, ky: (n, oy, 0, j)),
            ],
            out_specs=out_spec, out_shape=out_shape,
            scratch_shapes=[pltpu.VMEM((Wo, TN), jnp.float32)],
            compiler_params=sem,
            cost_estimate=pl.CostEstimate(
                flops=flops2, transcendentals=0,
                bytes_accessed=3 * o1p.size * 2 + 9 * Cp_out * Cp_out * 2
                + 2 * N * Ho * Wo * Cp_out * 4),
        )(o1p, params["w2"], xc)
    else:
        xs = xc[:, ::stride, ::stride, :].astype(jnp.bfloat16)      # (N, Ho, Wo, Cp_in)
        y = pl.pallas_call(
            functools.partial(_conv2_add_shortcut_kernel, Wo=Wo),
            grid=(N, NJ, Ho, 3),
            in_specs=common_in_specs + [
                pl.BlockSpec((1, 1, Wo, Cp_in), lambda n, j, oy, ky: (n, oy, 0, 0)),
                pl.BlockSpec((Cp_in, TN), lambda n, j, oy, ky: (0, j)),
                pl.BlockSpec((1, Cp_in), lambda n, j, oy, ky: (0, 0)),
                pl.BlockSpec((1, Cp_in), lambda n, j, oy, ky: (0, 0)),
            ],
            out_specs=out_spec, out_shape=out_shape,
            scratch_shapes=[pltpu.VMEM((Wo, TN), jnp.float32)],
            compiler_params=sem,
            cost_estimate=pl.CostEstimate(
                flops=flops2 + 2 * N * Ho * Wo * Cp_in * Cp_out, transcendentals=0,
                bytes_accessed=3 * o1p.size * 2 + xs.size * 2
                + (9 * Cp_out + Cp_in) * Cp_out * 2 + N * Ho * Wo * Cp_out * 4),
        )(o1p, params["w2"], xs, params["ws"],
          params["bn1_scale"], params["bn1_bias"])

    return y[..., :cout]


def wrn_basic_block(x_nchw, params, *, stride, equal_in_out, cout):
    """NCHW wrapper matching the PyTorch module interface (transpose only here;
    a full network should chain wrn_basic_block_nhwc and stay NHWC end-to-end)."""
    x = jnp.transpose(x_nchw, (0, 2, 3, 1))
    y = wrn_basic_block_nhwc(x, params, stride=stride,
                             equal_in_out=equal_in_out, cout=cout)
    return jnp.transpose(y, (0, 3, 1, 2))


# ------------------------- deterministic parameters ------------------------- #

def make_raw_params(key, cin, cout):
    ks = jax.random.split(key, 11)

    def nrm(k, shape, s=0.1):
        return s * jax.random.normal(k, shape, jnp.float32)

    return {
        "w1": nrm(ks[0], (cout, cin, 3, 3)),     # PyTorch OIHW
        "w2": nrm(ks[1], (cout, cout, 3, 3)),
        "ws": nrm(ks[2], (cout, cin, 1, 1)),
        "g1": 1.0 + nrm(ks[3], (cin,)),  "b1": nrm(ks[4], (cin,)),
        "m1": nrm(ks[5], (cin,)),
        "v1": 1.0 + 0.5 * jax.random.uniform(ks[6], (cin,), jnp.float32),
        "g2": 1.0 + nrm(ks[7], (cout,)), "b2": nrm(ks[8], (cout,)),
        "m2": nrm(ks[9], (cout,)),
        "v2": 1.0 + 0.5 * jax.random.uniform(ks[10], (cout,), jnp.float32),
    }


def fold_params(raw, eps):
    """Fold eval-mode BN into per-channel scale/bias; pad channels to lane width,
    reshape conv weights to (9, Cp_in, Cp_out) (tap-major), cast MXU operands to bf16."""
    cin, cout = raw["g1"].shape[0], raw["g2"].shape[0]
    cp_in, cp_out = _ceil_to(cin, LANE), _ceil_to(cout, LANE)

    s1 = raw["g1"] / jnp.sqrt(raw["v1"] + eps)
    b1 = raw["b1"] - raw["m1"] * s1
    s2 = raw["g2"] / jnp.sqrt(raw["v2"] + eps)
    b2 = raw["b2"] - raw["m2"] * s2

    def pad_vec(v, cp):
        return jnp.pad(v, (0, cp - v.shape[0]))[None, :].astype(jnp.float32)

    def conv_w(w, cpi, cpo):
        w = jnp.transpose(w, (2, 3, 1, 0))                    # OIHW -> (ky,kx,ci,co)
        w = jnp.pad(w, ((0, 0), (0, 0),
                        (0, cpi - w.shape[2]), (0, cpo - w.shape[3])))
        return w.reshape(9, cpi, cpo).astype(jnp.bfloat16)

    ws = jnp.transpose(raw["ws"][:, :, 0, 0], (1, 0))         # (cin, cout)
    ws = jnp.pad(ws, ((0, cp_in - cin), (0, cp_out - cout))).astype(jnp.bfloat16)

    return {
        "bn1_scale": pad_vec(s1, cp_in), "bn1_bias": pad_vec(b1, cp_in),
        "bn2_scale": pad_vec(s2, cp_out), "bn2_bias": pad_vec(b2, cp_out),
        "w1": conv_w(raw["w1"], cp_in, cp_out),
        "w2": conv_w(raw["w2"], cp_out, cp_out),
        "ws": ws,
    }


# ---------------------------- pure-JAX reference ---------------------------- #

def _ref_bn(x, g, b, m, v, eps):
    inv = g / jnp.sqrt(v + eps)
    return x * inv[None, :, None, None] + (b - m * inv)[None, :, None, None]


def _ref_conv(x, w, stride, pad):
    return lax.conv_general_dilated(
        x, w, (stride, stride), [(pad, pad), (pad, pad)],
        dimension_numbers=("NCHW", "OIHW", "NCHW"),
        precision=lax.Precision.HIGHEST)


def wrn_basic_block_ref(x, raw, *, stride, equal_in_out, eps):
    a = jax.nn.relu(_ref_bn(x, raw["g1"], raw["b1"], raw["m1"], raw["v1"], eps))
    out = _ref_conv(a, raw["w1"], stride, 1)
    out = jax.nn.relu(_ref_bn(out, raw["g2"], raw["b2"], raw["m2"], raw["v2"], eps))
    out = _ref_conv(out, raw["w2"], 1, 1)
    sc = x if equal_in_out else _ref_conv(a, raw["ws"], stride, 0)
    return sc + out


# ----------------------------------- main ----------------------------------- #

if __name__ == "__main__":
    eps = 1e-3  # batchnorm=0.001 in the module
    key = jax.random.PRNGKey(0)
    kx_, kp1, kp2 = jax.random.split(key, 3)
    x = jax.random.normal(kx_, (2, 4, 16, 16), jnp.float32)

    # case 1: equalInOut (identity shortcut); case 2: channel/stride change (convShortcut)
    cases = [(4, 4, 1, kp1), (4, 8, 2, kp2)]
    for cin, cout, stride, kp in cases:
        raw = make_raw_params(kp, cin, cout)
        params = fold_params(raw, eps)
        equal = (cin == cout)

        y = wrn_basic_block(x, params, stride=stride, equal_in_out=equal, cout=cout)
        y = jax.block_until_ready(y)

        y_ref = wrn_basic_block_ref(x, raw, stride=stride, equal_in_out=equal, eps=eps)
        assert y.shape == y_ref.shape, (y.shape, y_ref.shape)
        err = float(jnp.max(jnp.abs(y - y_ref)))
        # bf16 MXU operands with f32 accumulation -> a few e-3 expected error
        assert err < 3e-2, f"max abs error too large: {err}"

    print("KERNEL_OK")
</pallas_src>

<mosaic_0001>
module attributes {stable_mosaic.version = 11 : i64} {
  func.func @_conv1_bn_relu_kernel(%arg0: i32, %arg1: i32, %arg2: i32, %arg3: i32, %arg4: memref<1x1x18x128xbf16, #tpu.memory_space<vmem>>, %arg5: memref<9x128x128xbf16, #tpu.memory_space<vmem>>, %arg6: memref<1x128xf32, #tpu.memory_space<vmem>>, %arg7: memref<1x128xf32, #tpu.memory_space<vmem>>, %arg8: memref<1x128xf32, #tpu.memory_space<vmem>>, %arg9: memref<1x128xf32, #tpu.memory_space<vmem>>, %arg10: memref<1x1x16x128xbf16, #tpu.memory_space<vmem>>, %arg11: memref<16x128xf32, #tpu.memory_space<vmem>>) attributes {dimension_semantics = [#tpu.dimension_semantics<parallel>, #tpu.dimension_semantics<parallel>, #tpu.dimension_semantics<parallel>, #tpu.dimension_semantics<arbitrary>], iteration_bounds = array<i64: 2, 1, 16, 3>, scalar_prefetch = 0 : i64, scratch_operands = 1 : i64, tpu.core_type = #tpu.core_type<tc>, window_params = [{transform_indices = @transform_0, window_bounds = array<i64: 1, 1, 18, 128>}, {transform_indices = @transform_1, window_bounds = array<i64: 9, 128, 128>}, {pipeline_mode = #tpu.pipeline_mode<synchronous>, transform_indices = @transform_2, window_bounds = array<i64: 1, 128>}, {pipeline_mode = #tpu.pipeline_mode<synchronous>, transform_indices = @transform_3, window_bounds = array<i64: 1, 128>}, {transform_indices = @transform_4, window_bounds = array<i64: 1, 128>}, {transform_indices = @transform_5, window_bounds = array<i64: 1, 128>}, {transform_indices = @transform_6, window_bounds = array<i64: 1, 1, 16, 128>}]} {
    %c0_i32 = arith.constant 0 : i32
    %0 = arith.cmpi eq, %arg3, %c0_i32 : i32
    %1 = arith.extui %0 : i1 to i32
    %c0_i32_0 = arith.constant 0 : i32
    %2 = arith.cmpi ne, %1, %c0_i32_0 : i32
    scf.if %2 {
      %cst_33 = arith.constant 0.000000e+00 : f32
      %65 = vector.broadcast %cst_33 : f32 to vector<16x128xf32>
      %c0_34 = arith.constant 0 : index
      %c0_35 = arith.constant 0 : index
      %66 = vector.load %arg11[%c0_34, %c0_35] : memref<16x128xf32, #tpu.memory_space<vmem>>, vector<16x128xf32>
      tpu.vector_store %arg11[%c0_34, %c0_35], %65 {strides = array<i32>} : memref<16x128xf32, #tpu.memory_space<vmem>>, vector<16x128xf32>,
    } else {
    }
    %c1_i32 = arith.constant 1 : i32
    %3 = arith.muli %c1_i32, %arg2 : i32
    %4 = arith.addi %3, %arg3 : i32
    %c1_i32_1 = arith.constant 1 : i32
    %5 = arith.cmpi sge, %4, %c1_i32_1 : i32
    %c16_i32 = arith.constant 16 : i32
    %6 = arith.cmpi sle, %4, %c16_i32 : i32
    %7 = arith.andi %5, %6 : i1
    %c0 = arith.constant 0 : index
    %c0_2 = arith.constant 0 : index
    %c0_3 = arith.constant 0 : index
    %c0_4 = arith.constant 0 : index
    %8 = vector.load %arg4[%c0, %c0_2, %c0_3, %c0_4] : memref<1x1x18x128xbf16, #tpu.memory_space<vmem>>, vector<1x1x18x128xbf16>
    %9 = vector.shape_cast %8 : vector<1x1x18x128xbf16> to vector<18x128xbf16>
    %10 = arith.extf %9 : vector<18x128xbf16> to vector<18x128xf32>
    %c0_5 = arith.constant 0 : index
    %c0_6 = arith.constant 0 : index
    %11 = vector.load %arg6[%c0_5, %c0_6] : memref<1x128xf32, #tpu.memory_space<vmem>>, vector<1x128xf32>
    %12 = vector.broadcast %11 : vector<1x128xf32> to vector<18x128xf32>
    %13 = arith.mulf %10, %12 : vector<18x128xf32>
    %c0_7 = arith.constant 0 : index
    %c0_8 = arith.constant 0 : index
    %14 = vector.load %arg7[%c0_7, %c0_8] : memref<1x128xf32, #tpu.memory_space<vmem>>, vector<1x128xf32>
    %15 = vector.broadcast %14 : vector<1x128xf32> to vector<18x128xf32>
    %16 = arith.addf %13, %15 : vector<18x128xf32>
    %cst = arith.constant 0.000000e+00 : f32
    %17 = vector.broadcast %cst : f32 to vector<18x128xf32>
    %18 = arith.maximumf %16, %17 : vector<18x128xf32>
    %19 = tpu.iota {dimensions = array<i32: 0>} : vector<18x128xi32>
    %c1_i32_9 = arith.constant 1 : i32
    %20 = vector.broadcast %c1_i32_9 : i32 to vector<18x128xi32>
    %21 = arith.muli %20, %19 : vector<18x128xi32>
    %c0_i32_10 = arith.constant 0 : i32
    %22 = vector.broadcast %c0_i32_10 : i32 to vector<18x128xi32>
    %23 = arith.addi %22, %21 : vector<18x128xi32>
    %c1_i32_11 = arith.constant 1 : i32
    %24 = vector.broadcast %c1_i32_11 : i32 to vector<18x128xi32>
    %25 = arith.cmpi sge, %23, %24 : vector<18x128xi32>
    %26 = vector.broadcast %7 : i1 to vector<18x128xi1>
    %27 = arith.andi %26, %25 : vector<18x128xi1>
    %c16_i32_12 = arith.constant 16 : i32
    %28 = vector.broadcast %c16_i32_12 : i32 to vector<18x128xi32>
    %29 = arith.cmpi sle, %23, %28 : vector<18x128xi32>
    %30 = arith.andi %27, %29 : vector<18x128xi1>
    %cst_13 = arith.constant 0.000000e+00 : f32
    %31 = vector.broadcast %cst_13 : f32 to vector<18x128xf32>
    %32 = arith.select %30, %18, %31 : vector<18x128xi1>, vector<18x128xf32>
    %c0_14 = arith.constant 0 : index
    %c0_15 = arith.constant 0 : index
    %33 = vector.load %arg11[%c0_14, %c0_15] : memref<16x128xf32, #tpu.memory_space<vmem>>, vector<16x128xf32>
    %34 = vector.extract_strided_slice %32 {offsets = [0, 0], sizes = [16, 128], strides = [1, 1]} : vector<18x128xf32> to vector<16x128xf32>
    %35 = arith.truncf %34 : vector<16x128xf32> to vector<16x128xbf16>
    %c3_i32 = arith.constant 3 : i32
    %36 = arith.muli %c3_i32, %arg3 : i32
    %c0_i32_16 = arith.constant 0 : i32
    %37 = arith.addi %36, %c0_i32_16 : i32
    %38 = arith.index_cast %37 : i32 to index
    %c0_17 = arith.constant 0 : index
    %c0_18 = arith.constant 0 : index
    %39 = vector.load %arg5[%38, %c0_17, %c0_18] : memref<9x128x128xbf16, #tpu.memory_space<vmem>>, vector<1x128x128xbf16>
    %40 = vector.shape_cast %39 : vector<1x128x128xbf16> to vector<128x128xbf16>
    %cst_19 = arith.constant dense<0.000000e+00> : vector<16x128xf32>
    %41 = tpu.matmul %35, %40, %cst_19 {dimension_numbers = #tpu.dot_dimension_numbers<[1], [0], [0], [1], [0, 0, 1, 1], [], []>} : vector<16x128xbf16>, vector<128x128xbf16>, vector<16x128xf32> -> vector<16x128xf32>
    %42 = arith.addf %33, %41 : vector<16x128xf32>
    %43 = vector.extract_strided_slice %32 {offsets = [1, 0], sizes = [16, 128], strides = [1, 1]} : vector<18x128xf32> to vector<16x128xf32>
    %44 = arith.truncf %43 : vector<16x128xf32> to vector<16x128xbf16>
    %c3_i32_20 = arith.constant 3 : i32
    %45 = arith.muli %c3_i32_20, %arg3 : i32
    %c1_i32_21 = arith.constant 1 : i32
    %46 = arith.addi %45, %c1_i32_21 : i32
    %47 = arith.index_cast %46 : i32 to index
    %c0_22 = arith.constant 0 : index
    %c0_23 = arith.constant 0 : index
    %48 = vector.load %arg5[%47, %c0_22, %c0_23] : memref<9x128x128xbf16, #tpu.memory_space<vmem>>, vector<1x128x128xbf16>
    %49 = vector.shape_cast %48 : vector<1x128x128xbf16> to vector<128x128xbf16>
    %cst_24 = arith.constant dense<0.000000e+00> : vector<16x128xf32>
    %50 = tpu.matmul %44, %49, %cst_24 {dimension_numbers = #tpu.dot_dimension_numbers<[1], [0], [0], [1], [0, 0, 1, 1], [], []>} : vector<16x128xbf16>, vector<128x128xbf16>, vector<16x128xf32> -> vector<16x128xf32>
    %51 = arith.addf %42, %50 : vector<16x128xf32>
    %52 = vector.extract_strided_slice %32 {offsets = [2, 0], sizes = [16, 128], strides = [1, 1]} : vector<18x128xf32> to vector<16x128xf32>
    %53 = arith.truncf %52 : vector<16x128xf32> to vector<16x128xbf16>
    %c3_i32_25 = arith.constant 3 : i32
    %54 = arith.muli %c3_i32_25, %arg3 : i32
    %c2_i32 = arith.constant 2 : i32
    %55 = arith.addi %54, %c2_i32 : i32
    %56 = arith.index_cast %55 : i32 to index
    %c0_26 = arith.constant 0 : index
    %c0_27 = arith.constant 0 : index
    %57 = vector.load %arg5[%56, %c0_26, %c0_27] : memref<9x128x128xbf16, #tpu.memory_space<vmem>>, vector<1x128x128xbf16>
    %58 = vector.shape_cast %57 : vector<1x128x128xbf16> to vector<128x128xbf16>
    %cst_28 = arith.constant dense<0.000000e+00> : vector<16x128xf32>
    %59 = tpu.matmul %53, %58, %cst_28 {dimension_numbers = #tpu.dot_dimension_numbers<[1], [0], [0], [1], [0, 0, 1, 1], [], []>} : vector<16x128xbf16>, vector<128x128xbf16>, vector<16x128xf32> -> vector<16x128xf32>
    %60 = arith.addf %51, %59 : vector<16x128xf32>
    %c0_29 = arith.constant 0 : index
    %c0_30 = arith.constant 0 : index
    %61 = vector.load %arg11[%c0_29, %c0_30] : memref<16x128xf32, #tpu.memory_space<vmem>>, vector<16x128xf32>
    tpu.vector_store %arg11[%c0_29, %c0_30], %60 {strides = array<i32>} : memref<16x128xf32, #tpu.memory_space<vmem>>, vector<16x128xf32>,
    %c2_i32_31 = arith.constant 2 : i32
    %62 = arith.cmpi eq, %arg3, %c2_i32_31 : i32
    %63 = arith.extui %62 : i1 to i32
    %c0_i32_32 = arith.constant 0 : i32
    %64 = arith.cmpi ne, %63, %c0_i32_32 : i32
    scf.if %64 {
      %c0_33 = arith.constant 0 : index
      %c0_34 = arith.constant 0 : index
      %65 = vector.load %arg11[%c0_33, %c0_34] : memref<16x128xf32, #tpu.memory_space<vmem>>, vector<16x128xf32>
      %c0_35 = arith.constant 0 : index
      %c0_36 = arith.constant 0 : index
      %66 = vector.load %arg8[%c0_35, %c0_36] : memref<1x128xf32, #tpu.memory_space<vmem>>, vector<1x128xf32>
      %67 = vector.broadcast %66 : vector<1x128xf32> to vector<16x128xf32>
      %68 = arith.mulf %65, %67 : vector<16x128xf32>
      %c0_37 = arith.constant 0 : index
      %c0_38 = arith.constant 0 : index
      %69 = vector.load %arg9[%c0_37, %c0_38] : memref<1x128xf32, #tpu.memory_space<vmem>>, vector<1x128xf32>
      %70 = vector.broadcast %69 : vector<1x128xf32> to vector<16x128xf32>
      %71 = arith.addf %68, %70 : vector<16x128xf32>
      %cst_39 = arith.constant 0.000000e+00 : f32
      %72 = vector.broadcast %cst_39 : f32 to vector<16x128xf32>
      %73 = arith.maximumf %71, %72 : vector<16x128xf32>
      %74 = arith.truncf %73 : vector<16x128xf32> to vector<16x128xbf16>
      %c0_40 = arith.constant 0 : index
      %c0_41 = arith.constant 0 : index
      %c0_42 = arith.constant 0 : index
      %c0_43 = arith.constant 0 : index
      %75 = vector.load %arg10[%c0_40, %c0_41, %c0_42, %c0_43] : memref<1x1x16x128xbf16, #tpu.memory_space<vmem>>, vector<1x1x16x128xbf16>
      %76 = vector.shape_cast %75 : vector<1x1x16x128xbf16> to vector<16x128xbf16>
      %77 = vector.shape_cast %74 : vector<16x128xbf16> to vector<1x1x16x128xbf16>
      tpu.vector_store %arg10[%c0_40, %c0_41, %c0_42, %c0_43], %77 {strides = array<i32>} : memref<1x1x16x128xbf16, #tpu.memory_space<vmem>>, vector<1x1x16x128xbf16>,
    } else {
    }
    return
  }
  func.func @transform_0(%arg0: i32, %arg1: i32, %arg2: i32, %arg3: i32) -> (i32, i32, i32, i32) {
    %c1_i32 = arith.constant 1 : i32
    %0 = arith.muli %c1_i32, %arg2 : i32
    %1 = arith.addi %0, %arg3 : i32
    %c0_i32 = arith.constant 0 : i32
    %c0_i32_0 = arith.constant 0 : i32
    %c0_i32_1 = arith.constant 0 : i32
    return %arg0, %1, %c0_i32, %c0_i32_0 : i32, i32, i32, i32
  }
  func.func @transform_1(%arg0: i32, %arg1: i32, %arg2: i32, %arg3: i32) -> (i32, i32, i32) {
    %c0_i32 = arith.constant 0 : i32
    %c0_i32_0 = arith.constant 0 : i32
    %c0_i32_1 = arith.constant 0 : i32
    return %c0_i32, %c0_i32_0, %arg1 : i32, i32, i32
  }
  func.func @transform_2(%arg0: i32, %arg1: i32, %arg2: i32, %arg3: i32) -> (i32, i32) {
    %c0_i32 = arith.constant 0 : i32
    %c0_i32_0 = arith.constant 0 : i32
    %c0_i32_1 = arith.constant 0 : i32
    return %c0_i32, %c0_i32_0 : i32, i32
  }
  func.func @transform_3(%arg0: i32, %arg1: i32, %arg2: i32, %arg3: i32) -> (i32, i32) {
    %c0_i32 = arith.constant 0 : i32
    %c0_i32_0 = arith.constant 0 : i32
    %c0_i32_1 = arith.constant 0 : i32
    return %c0_i32, %c0_i32_0 : i32, i32
  }
  func.func @transform_4(%arg0: i32, %arg1: i32, %arg2: i32, %arg3: i32) -> (i32, i32) {
    %c0_i32 = arith.constant 0 : i32
    %c0_i32_0 = arith.constant 0 : i32
    return %c0_i32, %arg1 : i32, i32
  }
  func.func @transform_5(%arg0: i32, %arg1: i32, %arg2: i32, %arg3: i32) -> (i32, i32) {
    %c0_i32 = arith.constant 0 : i32
    %c0_i32_0 = arith.constant 0 : i32
    return %c0_i32, %arg1 : i32, i32
  }
  func.func @transform_6(%arg0: i32, %arg1: i32, %arg2: i32, %arg3: i32) -> (i32, i32, i32, i32) {
    %c0_i32 = arith.constant 0 : i32
    %c0_i32_0 = arith.constant 0 : i32
    return %arg0, %arg2, %c0_i32, %arg1 : i32, i32, i32, i32
  }
}

</mosaic_0001>

<bundles_post_ra>
// kernel: tpu_custom_call.1
= control target key start
LH: loop header
LB: loop body
LE: loop exit
PB: predicated region body
PF: predicated region fallthrough
CT: control target
= control target key end

     0   :  { %11 = vsyncpa [#allocation4], 0  ;;  %s1722_s0 = inlined_call_operand.vmem [shape: bf16[2,18,18,128], index: 0, kind: input, shape index: {}]   ;;  %s1723_s1 = inlined_call_operand.vmem [shape: bf16[9,128,128], index: 1, kind: input, shape index: {}]   ;;  %s1724_s2 = inlined_call_operand.vmem [shape: f32[1,128], index: 2, kind: input, shape index: {}]   ;;  %s1725_s3 = inlined_call_operand.vmem [shape: f32[1,128], index: 3, kind: input, shape index: {}]   ;;  %s1726_s4 = inlined_call_operand.vmem [shape: f32[1,128], index: 4, kind: input, shape index: {}]   ;;  %s1727_s5 = inlined_call_operand.vmem [shape: f32[1,128], index: 5, kind: input, shape index: {}]   ;;  %s1728_s6 = inlined_call_operand.hbm [shape: bf16[2,16,16,128], index: 6, kind: output, shape index: {}]  }
   0x1   :  { %13 = vsyncpa [#allocation4 + $0x1], 0  ;;  %s1432_s21 = smov 0   ;;  %s1434_s22 = smov 0  }
   0x2   :  { %s1436_s23 = smov 0   ;;  %s1438_s24 = smov 0  }
   0x3   :  { %s1440_s25 = smov 0   ;;  %s1442_s26 = smov 0  }
   0x4   :  { %s1444_s27 = smov 0   ;;  %s1446_s28 = smov 0  }
   0x5   :  { %s1448_s29 = smov 0   ;;  %s1450_s30 = smov 0  }
   0x6 LB: > { %1734 = sst [smem:[#allocation6_spill]] %s1381_s28  ;;  %s966_s7 = sadd.s32 4294967295, %s1389_s30   ;;  %s1389_s30 = sphi %s1450_s30, %s19_s30   ;;  %s1385_s29 = sphi %s1448_s29, %s1749_s29   ;;  %s1381_s28 = sphi %s1446_s28, %s1748_s28   ;;  %s1377_s27 = sphi %s1444_s27, %s1754_s27   ;;  %s1373_s26 = sphi %s1442_s26, %s1746_s26   ;;  %s1369_s25 = sphi %s1440_s25, %s1745_s25   ;;  %s1365_s24 = sphi %s1438_s24, %s1753_s24   ;;  %s1361_s23 = sphi %s1436_s23, %s1752_s23   ;;  %s1357_s22 = sphi %s1434_s22, %s1751_s22   ;;  %s1353_s21 = sphi %s1432_s21, %s1750_s21  }
   0x7   : > { %1735 = sst [smem:[#allocation7_spill]] %s1385_s29  ;;  %s967_s8 = sadd.s32 4294967294, %s1389_s30  }
   0x8   : > { %s34_s9 = sadd.s32 1, %s1377_s27  ;;  %s37_s10 = sadd.s32 1, %s1381_s28 }
   0x9   : > { %p35_p0 = scmp.ge.s32.totalorder %s34_s9, 3  ;;  %s45_s11 = sadd.s32 1, %s1385_s29 }
   0xa   : > { %p216_p1 = scmp.ne.s32.totalorder %s1361_s23, %s1357_s22  ;;  %p217_p2 = scmp.eq.s32.totalorder %s966_s7, 95 }
   0xb   : > { %s1756_s9 = smov (%p35_p0, %s34_s9), 0  ;;  %s1758_s10 = smov (!%p35_p0, %s37_s10), %s1381_s28 }
   0xc   : > { %1736 = sst [smem:[#allocation8_spill]] %s1756_s9  ;;  %p222_p3 = scmp.ne.s32.totalorder %s1357_s22, %s1353_s21 }
   0xd   : > { %p39_p4 = scmp.ge.s32.totalorder %s1758_s10, 16  ;;  %p223_p5 = scmp.eq.s32.totalorder %s967_s8, 95 }
   0xe   : > { %p1494_p6 = por %p217_p2, %p216_p1  ;;  %p973_p8 = scmp.ge.s32.totalorder %s1389_s30, 1 }
   0xf   : > { %s1760_s10 = smov (%p39_p4, %s1758_s10), 0  ;;  %s1762_s11 = smov (!%p39_p4, %s45_s11), %s1385_s29 }
  0x10   : > { %1738 = sst [smem:[#allocation9_spill]] %s1760_s10  ;;  %p1501_p7 = por %p223_p5, %p222_p3 }
  0x11   : > { %p47_p9 = scmp.ge.s32.totalorder %s1762_s11, 2  ;;  %p280_p10 = scmp.lt.s32.totalorder %s1389_s30, 97 }
  0x12   : > { %s200_s14 = ssub.s32 %s1381_s28, %s1760_s10  ;;  %s206_s17 = sadd.s32 1, %s1361_s23 }
  0x13   : > { %s1764_s11 = smov (%p47_p9, %s1762_s11), 0  ;;  %p281_p11 = pnand %p973_p8, %p280_p10 }
  0x14   : > { %1740 = sst [smem:[#allocation10_spill]] %s1764_s11  ;;  %s199_s15 = ssub.s32 %s1385_s29, %s1764_s11 }
  0x15   : > { %s201_s16 = sor.u32 %s200_s14, %s199_s15  ;;  %284 = sbr.rel (%p281_p11) target bundleno = 366 (0x16e), region = 44 }
  0x16   : > { %p204_p12 = scmp.eq.s32.totalorder %s201_s16, 0  ;;  %s1733_s19 = sand.u32 (!%p281_p11), 1, %s1357_s22  }
  0x17   : > { %s1520_s20 = sadd.s32 (!%p281_p11), %s1365_s24, %s1369_s25  ;;  %s1524_s7 = sshll.u32 (!%p281_p11), %s1733_s19, 3 }
  0x18   : > { %s1515_s18 = scalar_select %p204_p12, %s1361_s23, %s206_s17  }
  0x19   : > { %p326_p13 = scmp.lt.s32.totalorder (!%p281_p11), %s1373_s26, 1  ;;  %p328_p0 = scmp.lt.s32.totalorder (!%p281_p11), %s1520_s20, 17 }
  0x1a   : > { %s324_s28 = scalar_lea.vmem (!%p281_p11), [#allocation3], %s1524_s7  ;;  %p976_p1 = scmp.ne.s32.totalorder (!%p281_p11), %s1365_s24, 0 }
  0x1c   : > { %s327_s8 = scalar_select %p326_p13, %s1373_s26, 1 }
  0x1d   : > { %s329_s14 = scalar_select %p328_p0, %s1520_s20, 17 }
  0x1e   : > { %s1162_s15 = smul.u32 54, %s327_s8  ;;  %v1391_v0 = vmov (!%p976_p1), 0.0  }
  0x1f   : > { %s1161_s16 = smul.u32 3, %s329_s14  ;;  %351 = vst [vmem:[#allocation2] sm:$0xff] (!%p976_p1), %v1391_v0  ;;  %352 = vst [vmem:[#allocation2 + $0x8] sm:$0xff] (!%p976_p1), %v1391_v0 }
  0x20   : > { %350 = sbr.rel (%p976_p1) target bundleno = 39 (0x27), region = 48 }
  0x21   : > { %s332_s17 = sadd.s32 %s1162_s15, %s1161_s16 }
  0x22   : > { %s975_s11 = sshll.u32 %s332_s17, 2 }
  0x23   : > { %s334_s29 = scalar_lea.vmem %s1722_s0, %s975_s11 }
  0x27 PF: > { %s1054_s19 = smul.u32 192, %s1365_s24  ;;  %v1058_v1 = vld [vmem:[%s334_s29] sm:$0xff]   ;;  %v1392_v2 = vmov 0.0   ;;  %v360_v4 = vld [vmem:[%s334_s29 + $0x8] sm:$0x1]  ;;  %vm1393_vm0 = vmmov 0   ;;  %v387_v9 = vlaneseq }
  0x28   : > { %1113 = vmatprep.subr.bf16.mxu0 %v1392_v2  ;;  %1093 = vmatprep.subr.bf16.mxu1 %v1392_v2  ;;  %v1060_v3 = vunpack.c.h.bf16 %v1058_v1  ;;  %v977_v5 = vld [vmem:[%s1724_s2] ss:$0 sm:$0xff]  ;;  %v1059_v6 = vunpack.c.l.bf16 %v1058_v1  ;;  %p354_p2 = scmp.ge.s32.totalorder %s1520_s20, 1  ;;  %v363_v8 = vunpack.c.l.bf16 %v360_v4  ;;  %p355_p3 = scmp.le.s32.totalorder %s1520_s20, 16  ;;  %vm544_vm6 = vsmask.f32 7424 }
  0x29   : > { %s1544_s14 = scalar_lea.vmem %s1723_s1, %s1054_s19  ;;  %1129 = vmatprep.mubr.msk.bf16.mxu0 %vm1393_vm0, %v1392_v2  ;;  %1109 = vmatprep.mubr.msk.bf16.mxu1 %vm1393_vm0, %v1392_v2  ;;  %v978_v11 = vld [vmem:[%s1725_s3] ss:$0 sm:$0xff]  ;;  %v388_v15 = vshrl.u32 %v387_v9, 7  ;;  %vm671_vm8 = vcmask 1046528   ;;  %p1043_p5 = scmp.ne.s32.totalorder %s1365_s24, 2 }
  0x2a   : > { %v1255_v7 = vld [vmem:[%s1544_s14 + $0x40] sm:$0xff]   ;;  %v372_v10 = vmul.f32 %v1060_v3, %v977_v5  ;;  %v1256_v12 = vld [vmem:[%s1544_s14 + $0x48] sm:$0xff]   ;;  %v371_v13 = vmul.f32 %v1059_v6, %v977_v5  ;;  %v373_v14 = vmul.f32 %v977_v5, %v363_v8  ;;  %v1257_v17 = vld [vmem:[%s1544_s14 + $0x50] sm:$0xff]   ;;  %p1563_p4 = pnand %p355_p3, %p354_p2 }
  0x2b   : > { %1114 = vmatpush3.bf16.msra.mxu0 %v1255_v7  ;;  %v1262_v18 = vld [vmem:[%s1544_s14] sm:$0xff]   ;;  %v1258_v20 = vld [vmem:[%s1544_s14 + $0x58] sm:$0xff]   ;;  %v390_v22 = vadd.s32 16, %v388_v15  ;;  %v1264_v23 = vld [vmem:[%s1544_s14 + $0x8] sm:$0xff]   ;;  %vm391_vm1 = vcmp.ge.s32.totalorder %v388_v15, 1 }
  0x2c   : > { %1115 = vmatprep.subr.bf16.mxu0 %v1392_v2  ;;  %v1558_v16 = vadd.f32 %v978_v11, %v372_v10  ;;  %v1569_v19 = vadd.f32 %v978_v11, %v371_v13  ;;  %v383_v21 = vadd.f32 %v978_v11, %v373_v14  ;;  %1094 = vmatpush3.bf16.msra.mxu1 %v1262_v18  ;;  %s979_s20 = scalar_select %p1563_p4, 0, 1  ;;  %v1266_v28 = vld [vmem:[%s1544_s14 + $0x10] sm:$0xff]   ;;  %v1259_v29 = vld [vmem:[%s1544_s14 + $0x60] sm:$0xff]   ;;  %v1268_v35 = vld [vmem:[%s1544_s14 + $0x18] sm:$0xff]  }
  0x2d   : > { %1095 = vmatprep.subr.bf16.mxu1 %v1392_v2  ;;  %vm402_vm2 = vcmp.le.s32.totalorder %v390_v22, 16  ;;  %v1260_v36 = vld [vmem:[%s1544_s14 + $0x68] sm:$0xff]   ;;  %v1261_v39 = vld [vmem:[%s1544_s14 + $0x70] sm:$0xff]   ;;  %v1270_v41 = vld [vmem:[%s1544_s14 + $0x20] sm:$0xff]  }
  0x2e   : > { %v385_v24 = vmax.f32 %v1558_v16, 0.0  ;;  %v384_v25 = vmax.f32 %v1569_v19, 0.0  ;;  %v386_v26 = vmax.f32 %v383_v21, 0.0  ;;  %v395_v27 = vstv %s979_s20  ;;  %v1272_v44 = vld [vmem:[%s1544_s14 + $0x28] sm:$0xff]   ;;  %v1263_v45 = vld [vmem:[%s1544_s14 + $0x78] sm:$0xff]   ;;  %v1274_v48 = vld [vmem:[%s1544_s14 + $0x30] sm:$0xff]  }
  0x2f   : > { %1116 = vmatpush3.bf16.msra.mxu0 %v1256_v12  ;;  %vm396_vm3 = vcmp.eq.s32.totalorder %v395_v27, 1  ;;  %v1265_v50 = vld [vmem:[%s1544_s14 + $0x80] sm:$0xff]   ;;  %v1276_v51 = vld [vmem:[%s1544_s14 + $0x38] sm:$0xff]   ;;  %v1267_v52 = vld [vmem:[%s1544_s14 + $0x88] sm:$0xff]  }
  0x30   : > { %1117 = vmatprep.subr.bf16.mxu0 %v1392_v2  ;;  %1096 = vmatpush3.bf16.msra.mxu1 %v1264_v23  ;;  %vm1582_vm4 = vmand %vm396_vm3, %vm391_vm1  ;;  %v407_v31 = vsel %vm396_vm3, %v385_v24, 0.0  ;;  %v991_v53 = vpack.c.bf16 %v385_v24, %v384_v25  ;;  %v1269_v54 = vld [vmem:[%s1544_s14 + $0x90] sm:$0xff]   ;;  %v1271_v55 = vld [vmem:[%s1544_s14 + $0x98] sm:$0xff]  }
  0x31   : > { %1097 = vmatprep.subr.bf16.mxu1 %v1392_v2  ;;  %vm405_vm5 = vmand %vm396_vm3, %vm402_vm2  ;;  %v406_v32 = vsel %vm1582_vm4, %v384_v25, 0.0  ;;  %v1273_v56 = vld [vmem:[%s1544_s14 + $0xa0] sm:$0xff]   ;;  %v1275_v57 = vld [vmem:[%s1544_s14 + $0xa8] sm:$0xff]  }
  0x32   : > { %v408_v33 = vsel %vm405_vm5, %v386_v26, 0.0  ;;  %v1594_v34 = vpack.c.bf16 %v407_v31, %v406_v32  ;;  %vm990_vm7 = vmpackc.low %vm396_vm3, %vm1582_vm4  ;;  %v1277_v58 = vld [vmem:[%s1544_s14 + $0xb0] sm:$0xff]   ;;  %v1278_v59 = vld [vmem:[%s1544_s14 + $0xb8] sm:$0xff]  }
  0x33   : > { %1118 = vmatpush3.bf16.msra.mxu0 %v1257_v17  ;;  %v1598_v37 = vpack.c.bf16 %v408_v33, %v408_v33  ;;  %v409_v4 = vld [vmem:[#allocation2] sm:$0xff]  ;;  %v410_v6 = vld [vmem:[#allocation2 + $0x8] sm:$0xff] }
  0x34   : > { %1119 = vmatprep.subr.bf16.mxu0 %v1392_v2  ;;  %1098 = vmatpush3.bf16.msra.mxu1 %v1266_v28  ;;  %v548_v38 = vshll.u32 %v1594_v34, 16  ;;  %v546_v40 = vshrl.u32 %v1594_v34, 16  ;;  %v672_v60 = vrot.slane %v1594_v34, 1  ;;  %v1044_v15 = vld [vmem:[%s1726_s4] ss:$0 sm:$0xff] (!%p1043_p5) }
  0x35   : > { %1099 = vmatprep.subr.bf16.mxu1 %v1392_v2  ;;  %v553_v43 = vshll.u32 %v1598_v37, 16  ;;  %v673_v61 = vrot.slane %v1598_v37, 1  ;;  %v1045_v18 = vld [vmem:[%s1727_s5] ss:$0 sm:$0xff] (!%p1043_p5) }
  0x36   : > { %v550_v42 = vrot.slane %v548_v38, 1 }
  0x37   : > { %1120 = vmatpush3.bf16.msra.mxu0 %v1258_v20  ;;  %v555_v47 = vrot.slane %v553_v43, 1  ;;  %v674_v62 = vsel %vm671_vm8, %v672_v60, %v673_v61 }
  0x38   : > { %1121 = vmatprep.subr.bf16.mxu0 %v1392_v2  ;;  %1100 = vmatpush3.bf16.msra.mxu1 %v1268_v35  ;;  %v551_v46 = vor.u32 %v550_v42, %v546_v40 }
  0x39   : > { %1101 = vmatprep.subr.bf16.mxu1 %v1392_v2 }
  0x3a   : > { %v556_v49 = vsel %vm544_vm6, %v551_v46, %v555_v47 }
  0x3b   : > { %1122 = vmatpush3.bf16.msra.mxu0 %v1259_v29 }
  0x3c   : > { %1123 = vmatprep.subr.bf16.mxu0 %v1392_v2  ;;  %1102 = vmatpush3.bf16.msra.mxu1 %v1270_v41 }
  0x3d   : > { %1103 = vmatprep.subr.bf16.mxu1 %v1392_v2 }
  0x3f   : > { %1124 = vmatpush3.bf16.msra.mxu0 %v1260_v36 }
  0x40   : > { %1125 = vmatprep.subr.bf16.mxu0 %v1392_v2  ;;  %1104 = vmatpush3.bf16.msra.mxu1 %v1272_v44 }
  0x41   : > { %1105 = vmatprep.subr.bf16.mxu1 %v1392_v2 }
  0x43   : > { %1126 = vmatpush3.bf16.msra.mxu0 %v1261_v39 }
  0x44   : > { %1127 = vmatprep.subr.bf16.mxu0 %v1392_v2  ;;  %1106 = vmatpush3.bf16.msra.mxu1 %v1274_v48 }
  0x45   : > { %1107 = vmatprep.subr.bf16.mxu1 %v1392_v2 }
  0x47   : > { %1128 = vmatpush3.bf16.msra.mxu0 %v1263_v45 }
  0x48   : > { %1133 = vmatprep.subr.bf16.mxu0 %v1392_v2  ;;  %1108 = vmatpush3.bf16.msra.mxu1 %v1276_v51 }
  0x4a   : > { %1130 = vmatmul.mubr.bf16.vlgmr.msra.gmra.mrb[0].mxu0 %v556_v49 }
  0x4b   : > { %1134 = vmatpush3.bf16.msra.mxu0 %v1265_v50  ;;  %1149 = vmatprep.mubr.msk.bf16.mxu0 %vm1393_vm0, %v1392_v2 }
  0x4c   : > { %1135 = vmatprep.subr.bf16.mxu0 %v1392_v2  ;;  %1110 = vmatmul.mubr.msk.bf16.vlgmr.msra.gmra.mrb[0].mxu1 %vm990_vm7, %v991_v53 }
  0x4f   : > { %1136 = vmatpush3.bf16.msra.mxu0 %v1267_v52 }
  0x50   : > { %1137 = vmatprep.subr.bf16.mxu0 %v1392_v2 }
  0x53   : > { %1138 = vmatpush3.bf16.msra.mxu0 %v1269_v54 }
  0x54   : > { %1139 = vmatprep.subr.bf16.mxu0 %v1392_v2 }
  0x57   : > { %1140 = vmatpush3.bf16.msra.mxu0 %v1271_v55 }
  0x58   : > { %1141 = vmatprep.subr.bf16.mxu0 %v1392_v2 }
  0x5b   : > { %1142 = vmatpush3.bf16.msra.mxu0 %v1273_v56 }
  0x5c   : > { %1143 = vmatprep.subr.bf16.mxu0 %v1392_v2 }
  0x5f   : > { %1144 = vmatpush3.bf16.msra.mxu0 %v1275_v57 }
  0x60   : > { %1145 = vmatprep.subr.bf16.mxu0 %v1392_v2 }
  0x63   : > { %1146 = vmatpush3.bf16.msra.mxu0 %v1277_v58 }
  0x64   : > { %1147 = vmatprep.subr.bf16.mxu0 %v1392_v2 }
  0x67   : > { %1148 = vmatpush3.bf16.msra.mxu0 %v1278_v59 }
  0x6a   : > { %1150 = vmatmul.mubr.bf16.vlgmr.msra.gmra.mrb[0].mxu0 %v674_v62 }
 0x11f   : > { %v514_v63 = vpop.f32.mrb[0].mxu1 }
 0x120   : > { %v1111_v0 = vpop.f32.mrb[1].mxu1  ;;  %v521_v5 = vadd.f32 %v514_v63, %v409_v4 }
 0x121   : > { %v517_v1 = vpop.f32.mrb[2].mxu1 }
 0x122   : > { %v1112_v3 = vpop.f32.mrb[3].mxu1  ;;  %v522_v8 = vadd.f32 %v517_v1, %v410_v6 }
 0x13c   : > { %772 = sbr.rel (%p1043_p5) target bundleno = 339 (0x153), region = 52 }
 0x13d   : > { %v758_v7 = vpop.f32.mrb[0].mxu0 }
 0x13e   : > { %v1154_v9 = vadd.f32 %v758_v7, %v521_v5  ;;  %v1151_v10 = vpop.f32.mrb[1].mxu0 }
 0x13f   : > { %v761_v11 = vpop.f32.mrb[2].mxu0 }
 0x140   : > { %767 = vst [vmem:[#allocation2] sm:$0xff] %v1154_v9  ;;  %v1156_v12 = vadd.f32 %v761_v11, %v522_v8  ;;  %v1152_v13 = vpop.f32.mrb[3].mxu0 }
 0x142   : > { %768 = vst [vmem:[#allocation2 + $0x8] sm:$0xff] %v1156_v12 }
 0x147   : > { %v773_v2 = vld [vmem:[#allocation2] sm:$0xff] }
 0x148   : > { %v782_v16 = vmul.f32 %v1044_v15, %v773_v2 }
 0x149   : > { %v774_v14 = vld [vmem:[#allocation2 + $0x8] sm:$0xff] }
 0x14a   : > { %v783_v17 = vmul.f32 %v1044_v15, %v774_v14  ;;  %v791_v19 = vadd.f32 %v1045_v18, %v782_v16 }
 0x14c   : > { %v792_v20 = vadd.f32 %v1045_v18, %v783_v17  ;;  %v793_v21 = vmax.f32 %v791_v19, 0.0 }
 0x14e   : > { %v794_v22 = vmax.f32 %v792_v20, 0.0 }
 0x150   : > { %v1064_v23 = vpack.c.bf16 %v794_v22, %v793_v21 }
 0x152   : > { %1065 = vst [vmem:[%s324_s28] sm:$0xff] %v1064_v23  }
 0x153 PF: > { %s1049_s24 = sshll.u32 %s1369_s25, 1  ;;  %s1050_s11 = sshll.u32 %s1373_s26, 5 }
 0x154   : > { %s822_s8 = sshll.u32 %s324_s28, 4  ;;  %s819_s14 = sadd.s32 %s1050_s11, %s1049_s24  ;;  %s1655_s8 = int_to_ptr.vmem [resolvable:$true] %s822_s8 }
 0x155   : > { %s1051_s29 = sshll.u32 %s819_s14, 6  ;;  %s1744_s16 = sand.u32 1, %s1357_s22  }
 0x156   : > { %s1660_s20 = scalar_lea.hbm %s1728_s6, %s1051_s29  ;;  %s1664_s17 = scalar_lea.sflag [#allocation4], %s1744_s16 }
 0x157   : > { %s1279_s9 = scalar_lea.vmem %s1655_s8, 128  ;;  %s1394_s25 = smov [#allocation3]  }
 0x158   : > { %p1280_p8 = scmp.ne.s32.totalorder %s1655_s8, %s1279_s9  ;;  %s1283_s26 = sshll.u32 %s1394_s25, 4  ;;  %s1284_s26 = int_to_ptr.vmem [resolvable:$false] %s1283_s26 }
 0x159   : > { %s1285_s28 = scalar_lea.vmem %s1284_s26, 256  ;;  %p1286_p11 = scmp.lt.s32.totalorder %s1655_s8, %s1284_s26 }
 0x15a   : > { %p1281_p9 = pnand %p1280_p8, %p1494_p6  ;;  %p1287_p12 = scmp.lt.s32.totalorder %s1285_s28, %s1279_s9 }
 0x15c   : > { %p1282_p10 = pneg %p1281_p9  ;;  %p1288_p13 = por %p1287_p12, %p1286_p11 }
 0x15e   : > { %p1289_p0 = pnand %p1288_p13, %p1282_p10 }
 0x160   : > { %1292 = shalt.err (!%p1289_p0)
}
 0x161   : > { %s1293_s7 = scalar_lea.hbm %s1660_s20, 128  ;;  %s1297_s11 = scalar_lea.hbm %s1728_s6, 4096 }
 0x162   : > { %p1294_p1 = scmp.ne.s32.totalorder %s1660_s20, %s1293_s7  ;;  %p1298_p4 = scmp.lt.u32.totalorder %s1660_s20, %s1728_s6 }
 0x163   : > { %p1299_p5 = scmp.lt.u32.totalorder %s1297_s11, %s1293_s7  ;;  %p1301_p9 = scmp.lt.u32.totalorder %s1293_s7, %s1660_s20 }
 0x164   : > { %p1295_p2 = pnand %p1294_p1, %p1494_p6 }
 0x165   : > { %p1300_p8 = por %p1299_p5, %p1298_p4 }
 0x166   : > { %p1296_p3 = pneg %p1295_p2 }
 0x167   : > { %p1302_p10 = por %p1301_p9, %p1300_p8 }
 0x169   : > { %p1303_p11 = pnand %p1302_p10, %p1296_p3 }
 0x16b   : > { %1306 = shalt.err (!%p1303_p11)
}
 0x16c   : > { %s1395_s19 = smov 64   ;;  %s1396_s15 = smov 4  }
 0x16d   : > { %1163 = dma.vmem_to_hbm [thread:$0]  (%p1494_p6), %s1655_s8, 128, %s1660_s20, %s1664_s17, %s1395_s19, %s1395_s19, %s1396_s15  }
 0x16e PF: > { %p1169_p12 = scmp.ge.s32.totalorder %s1389_s30, 2  ;;  %s837_s16 = sand.u32 1, %s1353_s21  }
 0x16f   : > { %s838_s9 = scalar_lea.sflag [#allocation4], %s837_s16 }
 0x170   : > { %p1166_p13 = pnand %p1169_p12, %p1501_p7 }
 0x172   : > { %1348 = dma.done.wait (!%p1166_p13), %s838_s9, 128  }
 0x173   : > { %1350 = vsyncadd (!%p1166_p13), %s838_s9, 4294967168  ;;  %s19_s30 = sadd.s32 1, %s1389_s30   ;;  %s1745_s25 = sld [smem:[#allocation6_spill]] }
 0x174   : > { %p16_p0 = scmp.ge.s32.totalorder %s19_s30, 98   ;;  %s1746_s26 = sld [smem:[#allocation7_spill]] }
 0x175   : > { %s1747_s12 = sld [smem:[#allocation8_spill]]  ;;  %s1748_s28 = sld [smem:[#allocation9_spill]] }
 0x176   : > { %s1749_s29 = sld [smem:[#allocation10_spill]]  ;;  %s1750_s21 = smov %s1357_s22 }
 0x177   : > { %s1751_s22 = smov %s1361_s23  ;;  %s1752_s23 = smov %s1515_s18 }
 0x178   : > { %s1753_s24 = smov %s1377_s27  ;;  %18 = sbr.rel (!%p16_p0) target bundleno = 6 (0x6), region = 99 }
 0x17b   : > { %s1754_s27 = smov %s1747_s12 }
 0x17f   :  { %843 = vsyncpa [#allocation4], 1 }
 0x180   :  { %845 = vsyncpa [#allocation4 + $0x1], 1 }

</bundles_post_ra>
